<compile_context>
chip_gen: v7x
topology: tpu7x:2x2x1
jax: 0.10.0
libtpu: 0.0.40
codegen_flags: <defaults>
</compile_context>

<pallas_src>
import functools

import jax
import jax.numpy as jnp
from jax.experimental import pallas as pl
from jax.experimental.pallas import tpu as pltpu

HIDDEN_SIZE = 128
OUTPUT_SIZE = 37
LANE = 128


def _round_up(a, m):
    return ((a + m - 1) // m) * m


def _round_down(a, m):
    return (a // m) * m


def prepare_params(w1, b1, w2, b2, *, use_bf16=True):
    """One-time weight preprocessing. Hoist this out of the per-batch call (or pass its
    result via fnn_forward(..., prepared=...)) for repeated inference."""
    H = w1.shape[1]
    O = w2.shape[1]
    O_pad = _round_up(O, LANE)
    w_dtype = jnp.bfloat16 if use_bf16 else w1.dtype
    w1c = w1.astype(w_dtype)
    w2p = jnp.zeros((H, O_pad), w_dtype).at[:, :O].set(w2.astype(w_dtype))
    b1f = b1.reshape(1, H).astype(jnp.float32)
    b2p = jnp.zeros((1, O_pad), jnp.float32).at[0, :O].set(
        b2.reshape(-1).astype(jnp.float32))
    return w1c, b1f, w2p, b2p


def _make_fnn_kernel(compute_dtype, tk, f_valid, needs_mask):
    def kernel(x_ref, w1_ref, b1_ref, w2_ref, b2_ref, o_ref, acc_ref):
        k = pl.program_id(1)

        @pl.when(k == 0)
        def _init():
            acc_ref[...] = jnp.zeros_like(acc_ref)

        x = x_ref[...]
        if needs_mask:
            # Last K block is ragged: zero the columns past F before they hit the MXU.
            col = k * tk + jax.lax.broadcasted_iota(jnp.int32, x.shape, 1)
            x = jnp.where(col < f_valid, x, jnp.zeros_like(x))

        # fc1 partial product on the MXU: cast x to the compute dtype on the VPU here
        # (no extra HBM pass in the wrapper); accumulate in f32.
        acc_ref[...] += jnp.dot(x.astype(compute_dtype), w1_ref[...],
                                preferred_element_type=jnp.float32)

        @pl.when(k == pl.num_programs(1) - 1)
        def _finish():
            h = jnp.maximum(acc_ref[...] + b1_ref[...], 0.0)       # bias + ReLU in f32
            y = jnp.dot(h.astype(w2_ref.dtype), w2_ref[...],
                        preferred_element_type=jnp.float32)
            o_ref[...] = (y + b2_ref[...]).astype(o_ref.dtype)     # lane-dense, final dtype

    return kernel


def fnn_forward(x, w1, b1, w2, b2, *, tile_m=2048, tile_k=None, use_bf16=True,
                prepared=None):
    """x: (B, ...) flattened to (B, F); returns (B, OUTPUT_SIZE) in x's dtype."""
    B = x.shape[0]
    x2d = x.reshape(B, -1)                    # Flatten(start_dim=1) — layout glue, no copy pass
    F = x2d.shape[1]
    H = w1.shape[1]
    O = w2.shape[1]
    out_dtype = x2d.dtype

    if prepared is None:
        prepared = prepare_params(w1, b1, w2, b2, use_bf16=use_bf16)
    w1c, b1f, w2p, b2p = prepared
    O_pad = w2p.shape[1]

    compute_dtype = jnp.bfloat16 if use_bf16 else x2d.dtype
    x_item = jnp.dtype(x2d.dtype).itemsize
    w_item = jnp.dtype(w1c.dtype).itemsize
    o_item = jnp.dtype(out_dtype).itemsize

    # ---- generation-aware VMEM budget (v7x: 64 MiB physical; v5e/v6e: 128 MiB) ---------
    try:
        vmem_cap = int(pltpu.get_tpu_info().vmem_capacity_bytes)
    except Exception:
        vmem_cap = 64 * 1024 * 1024           # conservative fallback (v7x per-TC VMEM)
    budget = (vmem_cap * 3) // 4              # leave headroom for compiler scratch

    # ---- K tile: keep w1 fully resident unless its double-buffered footprint is large --
    if tile_k is None:
        if 2 * F * H * w_item <= budget // 3:
            TK = F
        else:
            TK = max(LANE, _round_down((budget // 3) // (2 * H * w_item), LANE))
            if TK >= F:
                TK = F
    else:
        TK = F if tile_k >= F else _round_up(tile_k, LANE)

    num_k = 1 if TK == F else pl.cdiv(F, TK)
    needs_mask = (TK != F) and (F % TK != 0)
    if TK != F and F % TK != 0:
        # Pad only the (cheap) weight along F so every w1 block is in-bounds & zero-filled.
        F_pad = _round_up(F, TK)
        w1c = jnp.zeros((F_pad, H), w1c.dtype).at[:F, :].set(w1c)

    # ---- batch tile: fill the VMEM budget (x dbl-buf + out dbl-buf + f32 accumulator) ---
    fixed = (2 * TK * H * w_item          # w1 (double-buffered)
             + 2 * H * O_pad * w_item     # w2
             + 2 * H * 4 + 2 * O_pad * 4) # biases
    per_row = 2 * TK * x_item + 2 * O_pad * o_item + H * 4
    max_tm = max(8, (budget - fixed) // per_row) if budget > fixed else 8
    TM = min(tile_m, max_tm, _round_up(B, 8))
    TM = max(8, _round_down(TM, 8))

    grid = (pl.cdiv(B, TM), num_k)            # no batch padding: ragged last tile is masked

    kernel = _make_fnn_kernel(compute_dtype, TK, F, needs_mask)

    out = pl.pallas_call(
        kernel,
        out_shape=jax.ShapeDtypeStruct((B, O_pad), out_dtype),
        grid=grid,
        in_specs=[
            pl.BlockSpec((TM, TK), lambda i, k: (i, k)),      # streamed activations (native dtype)
            pl.BlockSpec((TK, H), lambda i, k: (k, 0)),       # fc1 weights
            pl.BlockSpec((1, H), lambda i, k: (0, 0)),        # fc1 bias (resident)
            pl.BlockSpec((H, O_pad), lambda i, k: (0, 0)),    # fc2 weights (resident)
            pl.BlockSpec((1, O_pad), lambda i, k: (0, 0)),    # fc2 bias (resident)
        ],
        out_specs=pl.BlockSpec((TM, O_pad), lambda i, k: (i, 0)),
        scratch_shapes=[pltpu.VMEM((TM, H), jnp.float32)],    # f32 fc1 accumulator
        compiler_params=pltpu.CompilerParams(
            dimension_semantics=("parallel", "arbitrary"),
            vmem_limit_bytes=int(budget),
        ),
    )(x2d, w1c, b1f, w2p, b2p)

    return out[:, :O]


def init_params(key, input_size, hidden_size=HIDDEN_SIZE, output_size=OUTPUT_SIZE,
                dtype=jnp.float32):
    """torch.nn.Linear-style init U(-1/sqrt(fan_in), 1/sqrt(fan_in)); weights stored (in, out)."""
    k1, k2, k3, k4 = jax.random.split(key, 4)
    bound1 = 1.0 / (input_size ** 0.5)
    bound2 = 1.0 / (hidden_size ** 0.5)
    w1 = jax.random.uniform(k1, (input_size, hidden_size), dtype, -bound1, bound1)
    b1 = jax.random.uniform(k2, (1, hidden_size), dtype, -bound1, bound1)
    w2 = jax.random.uniform(k3, (hidden_size, output_size), dtype, -bound2, bound2)
    b2 = jax.random.uniform(k4, (1, output_size), dtype, -bound2, bound2)
    return w1, b1, w2, b2


if __name__ == "__main__":
    key = jax.random.PRNGKey(0)
    kx, kp = jax.random.split(key)

    # Small example consistent with the module: NCHW (2, 4, 16, 16) -> flatten to (2, 1024)
    B, C, Hh, Ww = 2, 4, 16, 16
    x = jax.random.normal(kx, (B, C, Hh, Ww), jnp.float32)
    input_size = C * Hh * Ww

    w1, b1, w2, b2 = init_params(kp, input_size)

    x2d = x.reshape(B, -1)
    ref_f32 = jnp.maximum(x2d @ w1 + b1, 0.0) @ w2 + b2

    # 1) Default fused bf16-MXU path (x cast to bf16 inside the kernel).
    out = jax.block_until_ready(fnn_forward(x, w1, b1, w2, b2))
    assert out.shape == (B, OUTPUT_SIZE)
    xb, w1b, w2b = (a.astype(jnp.bfloat16) for a in (x2d, w1, w2))
    h_ref = jnp.maximum(jnp.dot(xb, w1b, preferred_element_type=jnp.float32) + b1, 0.0)
    ref_bf16 = jnp.dot(h_ref.astype(jnp.bfloat16), w2b,
                       preferred_element_type=jnp.float32) + b2
    assert jnp.allclose(out, ref_bf16, atol=1e-2, rtol=1e-2)

    # 2) Pure f32 path against exact f32 reference.
    out_f32 = jax.block_until_ready(fnn_forward(x, w1, b1, w2, b2, use_bf16=False))
    assert jnp.allclose(out_f32, ref_f32, atol=1e-5, rtol=1e-5)

    # 3) Force the K-split (reduction-axis + f32 accumulator) path and check it too.
    out_ks = jax.block_until_ready(
        fnn_forward(x, w1, b1, w2, b2, use_bf16=False, tile_k=256))
    assert jnp.allclose(out_ks, ref_f32, atol=1e-4, rtol=1e-4)

    print("KERNEL_OK")
</pallas_src>

<mosaic_0001>
module attributes {stable_mosaic.version = 11 : i64} {
  func.func @kernel(%arg0: i32, %arg1: i32, %arg2: memref<8x1024xf32, #tpu.memory_space<vmem>>, %arg3: memref<1024x128xbf16, #tpu.memory_space<vmem>>, %arg4: memref<1x128xf32, #tpu.memory_space<vmem>>, %arg5: memref<128x128xbf16, #tpu.memory_space<vmem>>, %arg6: memref<1x128xf32, #tpu.memory_space<vmem>>, %arg7: memref<8x128xf32, #tpu.memory_space<vmem>>, %arg8: memref<8x128xf32, #tpu.memory_space<vmem>>) attributes {dimension_semantics = [#tpu.dimension_semantics<parallel>, #tpu.dimension_semantics<arbitrary>], iteration_bounds = array<i64: 1, 1>, scalar_prefetch = 0 : i64, scratch_operands = 1 : i64, tpu.core_type = #tpu.core_type<tc>, window_params = [{transform_indices = @transform_0, window_bounds = array<i64: 8, 1024>}, {transform_indices = @transform_1, window_bounds = array<i64: 1024, 128>}, {pipeline_mode = #tpu.pipeline_mode<synchronous>, transform_indices = @transform_2, window_bounds = array<i64: 1, 128>}, {pipeline_mode = #tpu.pipeline_mode<synchronous>, transform_indices = @transform_3, window_bounds = array<i64: 128, 128>}, {pipeline_mode = #tpu.pipeline_mode<synchronous>, transform_indices = @transform_4, window_bounds = array<i64: 1, 128>}, {transform_indices = @transform_5, window_bounds = array<i64: 8, 128>}]} {
    %c0_i32 = arith.constant 0 : i32
    %0 = arith.cmpi eq, %arg1, %c0_i32 : i32
    %1 = arith.extui %0 : i1 to i32
    %c0_i32_0 = arith.constant 0 : i32
    %2 = arith.cmpi ne, %1, %c0_i32_0 : i32
    scf.if %2 {
      %cst_10 = arith.constant 0.000000e+00 : f32
      %13 = vector.broadcast %cst_10 : f32 to vector<8x128xf32>
      %c0_11 = arith.constant 0 : index
      %c0_12 = arith.constant 0 : index
      %14 = vector.load %arg8[%c0_11, %c0_12] : memref<8x128xf32, #tpu.memory_space<vmem>>, vector<8x128xf32>
      tpu.vector_store %arg8[%c0_11, %c0_12], %13 {strides = array<i32>} : memref<8x128xf32, #tpu.memory_space<vmem>>, vector<8x128xf32>,
    } else {
    }
    %c0 = arith.constant 0 : index
    %c0_1 = arith.constant 0 : index
    %3 = vector.load %arg2[%c0, %c0_1] : memref<8x1024xf32, #tpu.memory_space<vmem>>, vector<8x1024xf32>
    %c0_2 = arith.constant 0 : index
    %c0_3 = arith.constant 0 : index
    %4 = vector.load %arg8[%c0_2, %c0_3] : memref<8x128xf32, #tpu.memory_space<vmem>>, vector<8x128xf32>
    %5 = arith.truncf %3 : vector<8x1024xf32> to vector<8x1024xbf16>
    %c0_4 = arith.constant 0 : index
    %c0_5 = arith.constant 0 : index
    %6 = vector.load %arg3[%c0_4, %c0_5] : memref<1024x128xbf16, #tpu.memory_space<vmem>>, vector<1024x128xbf16>
    %cst = arith.constant dense<0.000000e+00> : vector<8x128xf32>
    %7 = tpu.matmul %5, %6, %cst {dimension_numbers = #tpu.dot_dimension_numbers<[1], [0], [0], [1], [0, 0, 1, 1], [], []>} : vector<8x1024xbf16>, vector<1024x128xbf16>, vector<8x128xf32> -> vector<8x128xf32>
    %8 = arith.addf %4, %7 : vector<8x128xf32>
    %c0_6 = arith.constant 0 : index
    %c0_7 = arith.constant 0 : index
    %9 = vector.load %arg8[%c0_6, %c0_7] : memref<8x128xf32, #tpu.memory_space<vmem>>, vector<8x128xf32>
    tpu.vector_store %arg8[%c0_6, %c0_7], %8 {strides = array<i32>} : memref<8x128xf32, #tpu.memory_space<vmem>>, vector<8x128xf32>,
    %c0_i32_8 = arith.constant 0 : i32
    %10 = arith.cmpi eq, %arg1, %c0_i32_8 : i32
    %11 = arith.extui %10 : i1 to i32
    %c0_i32_9 = arith.constant 0 : i32
    %12 = arith.cmpi ne, %11, %c0_i32_9 : i32
    scf.if %12 {
      %c0_10 = arith.constant 0 : index
      %c0_11 = arith.constant 0 : index
      %13 = vector.load %arg8[%c0_10, %c0_11] : memref<8x128xf32, #tpu.memory_space<vmem>>, vector<8x128xf32>
      %c0_12 = arith.constant 0 : index
      %c0_13 = arith.constant 0 : index
      %14 = vector.load %arg4[%c0_12, %c0_13] : memref<1x128xf32, #tpu.memory_space<vmem>>, vector<1x128xf32>
      %15 = vector.broadcast %14 : vector<1x128xf32> to vector<8x128xf32>
      %16 = arith.addf %13, %15 : vector<8x128xf32>
      %cst_14 = arith.constant 0.000000e+00 : f32
      %17 = vector.broadcast %cst_14 : f32 to vector<8x128xf32>
      %18 = arith.maximumf %16, %17 : vector<8x128xf32>
      %19 = arith.truncf %18 : vector<8x128xf32> to vector<8x128xbf16>
      %c0_15 = arith.constant 0 : index
      %c0_16 = arith.constant 0 : index
      %20 = vector.load %arg5[%c0_15, %c0_16] : memref<128x128xbf16, #tpu.memory_space<vmem>>, vector<128x128xbf16>
      %cst_17 = arith.constant dense<0.000000e+00> : vector<8x128xf32>
      %21 = tpu.matmul %19, %20, %cst_17 {dimension_numbers = #tpu.dot_dimension_numbers<[1], [0], [0], [1], [0, 0, 1, 1], [], []>} : vector<8x128xbf16>, vector<128x128xbf16>, vector<8x128xf32> -> vector<8x128xf32>
      %c0_18 = arith.constant 0 : index
      %c0_19 = arith.constant 0 : index
      %22 = vector.load %arg6[%c0_18, %c0_19] : memref<1x128xf32, #tpu.memory_space<vmem>>, vector<1x128xf32>
      %23 = vector.broadcast %22 : vector<1x128xf32> to vector<8x128xf32>
      %24 = arith.addf %21, %23 : vector<8x128xf32>
      %c0_20 = arith.constant 0 : index
      %c0_21 = arith.constant 0 : index
      %25 = vector.load %arg7[%c0_20, %c0_21] : memref<8x128xf32, #tpu.memory_space<vmem>>, vector<8x128xf32>
      tpu.vector_store %arg7[%c0_20, %c0_21], %24 {strides = array<i32>} : memref<8x128xf32, #tpu.memory_space<vmem>>, vector<8x128xf32>,
    } else {
    }
    return
  }
  func.func @transform_0(%arg0: i32, %arg1: i32) -> (i32, i32) {
    %c0_i32 = arith.constant 0 : i32
    return %arg0, %arg1 : i32, i32
  }
  func.func @transform_1(%arg0: i32, %arg1: i32) -> (i32, i32) {
    %c0_i32 = arith.constant 0 : i32
    %c0_i32_0 = arith.constant 0 : i32
    return %arg1, %c0_i32 : i32, i32
  }
  func.func @transform_2(%arg0: i32, %arg1: i32) -> (i32, i32) {
    %c0_i32 = arith.constant 0 : i32
    %c0_i32_0 = arith.constant 0 : i32
    %c0_i32_1 = arith.constant 0 : i32
    return %c0_i32, %c0_i32_0 : i32, i32
  }
  func.func @transform_3(%arg0: i32, %arg1: i32) -> (i32, i32) {
    %c0_i32 = arith.constant 0 : i32
    %c0_i32_0 = arith.constant 0 : i32
    %c0_i32_1 = arith.constant 0 : i32
    return %c0_i32, %c0_i32_0 : i32, i32
  }
  func.func @transform_4(%arg0: i32, %arg1: i32) -> (i32, i32) {
    %c0_i32 = arith.constant 0 : i32
    %c0_i32_0 = arith.constant 0 : i32
    %c0_i32_1 = arith.constant 0 : i32
    return %c0_i32, %c0_i32_0 : i32, i32
  }
  func.func @transform_5(%arg0: i32, %arg1: i32) -> (i32, i32) {
    %c0_i32 = arith.constant 0 : i32
    %c0_i32_0 = arith.constant 0 : i32
    return %arg0, %c0_i32 : i32, i32
  }
}

</mosaic_0001>

<bundles_post_ra>
// kernel: tpu_custom_call.1
= control target key start
LH: loop header
LB: loop body
LE: loop exit
PB: predicated region body
PF: predicated region fallthrough
CT: control target
= control target key end

     0   :  { %10 = vsyncpa [#allocation4], 0  ;;  %s1486_s0 = inlined_call_operand.hbm [shape: f32[2,1024], index: 0, kind: input, shape index: {}]   ;;  %s1487_s1 = inlined_call_operand.hbm [shape: bf16[1024,128], index: 1, kind: input, shape index: {}]   ;;  %s1488_s2 = inlined_call_operand.vmem [shape: f32[1,128], index: 2, kind: input, shape index: {}]   ;;  %s1489_s3 = inlined_call_operand.hbm [shape: bf16[128,128], index: 3, kind: input, shape index: {}]   ;;  %s1490_s4 = inlined_call_operand.vmem [shape: f32[1,128], index: 4, kind: input, shape index: {}]   ;;  %s1491_s5 = inlined_call_operand.hbm [shape: f32[2,128], index: 5, kind: output, shape index: {}]  }
   0x1   :  { %11 = vsyncpa [#allocation7], 0 }
   0x2   :  { %12 = vsyncpa [#allocation5], 0 }
   0x3   :  { %17 = vsyncadd [#allocation4], 768  ;;  %s1373_s18 = smov [#allocation6]   ;;  %s1279_s22 = scalar_lea.hbm %s1487_s1, 8192 }
   0x4   :  { %s30_s19 = sshll.u32 %s1373_s18, 4  ;;  %p1280_p0 = scmp.ne.s32.totalorder %s1487_s1, %s1279_s22  ;;  %s31_s19 = int_to_ptr.vmem [resolvable:$true] %s30_s19 }
   0x5   :  { %p1283_p1 = scmp.lt.u32.totalorder %s1279_s22, %s1487_s1 }
   0x7   :  { %p1285_p2 = pnand %p1283_p1, %p1280_p0 }
   0x9   :  { %1288 = shalt.err (!%p1285_p2)
}
   0xa   :  { %s1289_s27 = scalar_lea.vmem %s31_s19, 8192  ;;  %p1294_p4 = scmp.lt.s32.totalorder %s31_s19, %s31_s19 }
   0xb   :  { %p1290_p3 = scmp.ne.s32.totalorder %s31_s19, %s1289_s27  ;;  %p1295_p5 = scmp.lt.s32.totalorder %s1289_s27, %s1289_s27 }
   0xd   :  { %p1296_p6 = por %p1295_p5, %p1294_p4 }
   0xf   :  { %p1297_p7 = pnand %p1296_p6, %p1290_p3 }
  0x11   :  { %1300 = shalt.err (!%p1297_p7)
}
  0x12   :  { %s1374_s28 = smov 64   ;;  %s1375_s29 = smov 4  }
  0x13   :  { %36 = dma.hbm_to_vmem [thread:$0]  %s1487_s1, 8192, %s31_s19, [#allocation7], %s1374_s28, %s1374_s28, %s1375_s29  }
  0x14   :  { %s1376_s7 = smov [#allocation3]   ;;  %s1301_s11 = scalar_lea.hbm %s1486_s0, 256 }
  0x15   :  { %s18_s8 = sshll.u32 %s1376_s7, 4  ;;  %p1302_p8 = scmp.ne.s32.totalorder %s1486_s0, %s1301_s11  ;;  %s19_s8 = int_to_ptr.vmem [resolvable:$true] %s18_s8 }
  0x16   :  { %p1305_p9 = scmp.lt.u32.totalorder %s1301_s11, %s1486_s0 }
  0x18   :  { %p1307_p10 = pnand %p1305_p9, %p1302_p8 }
  0x1a   :  { %1310 = shalt.err (!%p1307_p10)
}
  0x1b   :  { %s1311_s16 = scalar_lea.vmem %s19_s8, 256  ;;  %s1315_s1 = scalar_lea.vmem %s19_s8, 1024 }
  0x1c   :  { %p1312_p11 = scmp.ne.s32.totalorder %s19_s8, %s1311_s16  ;;  %p1316_p12 = scmp.lt.s32.totalorder %s19_s8, %s19_s8 }
  0x1d   :  { %p1317_p13 = scmp.lt.s32.totalorder %s1315_s1, %s1311_s16 }
  0x1f   :  { %p1318_p0 = por %p1317_p13, %p1316_p12 }
  0x21   :  { %p1319_p1 = pnand %p1318_p0, %p1312_p11 }
  0x23   :  { %1322 = shalt.err (!%p1319_p1)
}
  0x24   :  { %s1377_s17 = smov 256   ;;  %s1378_s18 = smov 16  }
  0x25   :  { %24 = dma.hbm_to_vmem [thread:$0]  %s1486_s0, 256, %s19_s8, [#allocation4], %s1377_s17, %s1377_s17, %s1378_s18  }
  0x26   :  { %s1379_s21 = smov [#allocation8]   ;;  %s1323_s25 = scalar_lea.hbm %s1489_s3, 1024 }
  0x27   :  { %s44_s22 = sshll.u32 %s1379_s21, 4  ;;  %p1324_p2 = scmp.ne.s32.totalorder %s1489_s3, %s1323_s25  ;;  %s45_s22 = int_to_ptr.vmem [resolvable:$true] %s44_s22 }
  0x28   :  { %p1327_p3 = scmp.lt.u32.totalorder %s1323_s25, %s1489_s3 }
  0x2a   :  { %p1329_p4 = pnand %p1327_p3, %p1324_p2 }
  0x2c   :  { %1332 = shalt.err (!%p1329_p4)
}
  0x2d   :  { %s1333_s7 = scalar_lea.vmem %s45_s22, 1024  ;;  %p1338_p6 = scmp.lt.s32.totalorder %s45_s22, %s45_s22 }
  0x2e   :  { %p1334_p5 = scmp.ne.s32.totalorder %s45_s22, %s1333_s7  ;;  %p1339_p7 = scmp.lt.s32.totalorder %s1333_s7, %s1333_s7 }
  0x30   :  { %p1340_p8 = por %p1339_p7, %p1338_p6 }
  0x32   :  { %p1341_p9 = pnand %p1340_p8, %p1334_p5 }
  0x34   :  { %1344 = shalt.err (!%p1341_p9)
}
  0x35   :  { %50 = dma.hbm_to_vmem [thread:$0]  %s1489_s3, 1024, %s45_s22, [#allocation7], %s1374_s28, %s1374_s28, %s1375_s29  }
  0x36   :  { %1367 = dma.done.wait [#allocation4], 1024  }
  0x37   :  { %1368 = vsyncadd [#allocation4], 4294966272 }
  0x38   :  { %1369 = dma.done.wait [#allocation7], 9216  }
  0x39   :  { %1370 = vsyncadd [#allocation7], 4294958080  ;;  %v1195_v0 = vld [vmem:[#allocation6 + $0x40] sm:$0xff]   ;;  %v1199_v4 = vld [vmem:[#allocation6 + $0x48] sm:$0xff]   ;;  %v1380_v24 = vmov 1983009808   ;;  %v92_v26 = vlaneseq }
  0x3a   :  { %v1196_v1 = vld [vmem:[#allocation6 + $0xc0] sm:$0xff]   ;;  %1065 = vmatprep.subr.bf16.mxu0 %v1195_v0  ;;  %v1200_v5 = vld [vmem:[#allocation6 + $0xc8] sm:$0xff]   ;;  %v1203_v8 = vld [vmem:[#allocation6 + $0x50] sm:$0xff]   ;;  %v90_v25 = vunpack.c.l.s4 %v1380_v24  ;;  %vm1382_vm0 = vmmov 0  }
  0x3b   :  { %v1197_v2 = vld [vmem:[#allocation6] sm:$0xff]   ;;  %1087 = vmatprep.subr.bf16.mxu1 %v1196_v1  ;;  %v1201_v6 = vld [vmem:[#allocation6 + $0x8] sm:$0xff]   ;;  %v1204_v9 = vld [vmem:[#allocation6 + $0xd0] sm:$0xff]   ;;  %v93_v32 = vshrl.u32 %v92_v26, 7 }
  0x3c   :  { %v1198_v3 = vld [vmem:[#allocation6 + $0x80] sm:$0xff]   ;;  %1066 = vmatpush3.bf16.msra.mxu0 %v1197_v2  ;;  %v1202_v7 = vld [vmem:[#allocation6 + $0x88] sm:$0xff]   ;;  %v1205_v10 = vld [vmem:[#allocation6 + $0x10] sm:$0xff]   ;;  %v91_v31 = vunpack.c.0.s8 %v90_v25 }
  0x3d   :  { %1088 = vmatpush3.bf16.msra.mxu1 %v1198_v3  ;;  %1067 = vmatprep.subr.bf16.mxu0 %v1199_v4  ;;  %v1206_v11 = vld [vmem:[#allocation6 + $0x90] sm:$0xff]   ;;  %v1207_v12 = vld [vmem:[#allocation6 + $0x58] sm:$0xff]   ;;  %v1211_v16 = vld [vmem:[#allocation6 + $0x60] sm:$0xff]  }
  0x3e   :  { %1089 = vmatprep.subr.bf16.mxu1 %v1200_v5  ;;  %v1208_v13 = vld [vmem:[#allocation6 + $0xd8] sm:$0xff]   ;;  %v1212_v17 = vld [vmem:[#allocation6 + $0xe0] sm:$0xff]   ;;  %v1215_v20 = vld [vmem:[#allocation6 + $0x68] sm:$0xff]   ;;  %v1458_v37 = vsub.s32 %v91_v31, %v93_v32 }
  0x3f   :  { %v1209_v14 = vld [vmem:[#allocation6 + $0x18] sm:$0xff]   ;;  %v1213_v18 = vld [vmem:[#allocation6 + $0x20] sm:$0xff]   ;;  %v1216_v21 = vld [vmem:[#allocation6 + $0xe8] sm:$0xff]  }
  0x40   :  { %1068 = vmatpush3.bf16.msra.mxu0 %v1201_v6  ;;  %v1210_v15 = vld [vmem:[#allocation6 + $0x98] sm:$0xff]   ;;  %v1214_v19 = vld [vmem:[#allocation6 + $0xa0] sm:$0xff]   ;;  %v1217_v22 = vld [vmem:[#allocation6 + $0x28] sm:$0xff]  }
  0x41   :  { %1090 = vmatpush3.bf16.msra.mxu1 %v1202_v7  ;;  %1069 = vmatprep.subr.bf16.mxu0 %v1203_v8  ;;  %v1218_v23 = vld [vmem:[#allocation6 + $0xa8] sm:$0xff]   ;;  %v1219_v27 = vld [vmem:[#allocation6 + $0x70] sm:$0xff]   ;;  %v1223_v33 = vld [vmem:[#allocation6 + $0x78] sm:$0xff]  }
  0x42   :  { %1091 = vmatprep.subr.bf16.mxu1 %v1204_v9  ;;  %v1220_v28 = vld [vmem:[#allocation6 + $0xf0] sm:$0xff]   ;;  %v1224_v34 = vld [vmem:[#allocation6 + $0xf8] sm:$0xff]   ;;  %v1233_v44 = vld [vmem:[#allocation6 + $0x140] sm:$0xff]  }
  0x43   :  { %v1221_v29 = vld [vmem:[#allocation6 + $0x30] sm:$0xff]   ;;  %v1225_v35 = vld [vmem:[#allocation6 + $0x38] sm:$0xff]   ;;  %v1234_v47 = vld [vmem:[#allocation6 + $0x1c0] sm:$0xff]  }
  0x44   :  { %1070 = vmatpush3.bf16.msra.mxu0 %v1205_v10  ;;  %v1222_v30 = vld [vmem:[#allocation6 + $0xb0] sm:$0xff]   ;;  %v1226_v36 = vld [vmem:[#allocation6 + $0xb8] sm:$0xff]   ;;  %v1235_v50 = vld [vmem:[#allocation6 + $0x100] sm:$0xff]  }
  0x45   :  { %1092 = vmatpush3.bf16.msra.mxu1 %v1206_v11  ;;  %1071 = vmatprep.subr.bf16.mxu0 %v1207_v12  ;;  %v1227_v38 = vld [vmem:[#allocation3] ss:$16 sps:$4 sm:$0xff]   ;;  %v1231_v40 = vld [vmem:[#allocation3 + $0x4] ss:$16 sps:$4 sm:$0xff]   ;;  %v1237_v56 = vld [vmem:[#allocation6 + $0x148] sm:$0xff]  }
  0x46   :  { %1093 = vmatprep.subr.bf16.mxu1 %v1208_v13  ;;  %v1229_v39 = vld [vmem:[#allocation3 + $0x20] ss:$16 sps:$4 sm:$0xff]   ;;  %v1232_v41 = vld [vmem:[#allocation3 + $0x24] ss:$16 sps:$4 sm:$0xff]   ;;  %v95_v42 = vrot.slane %v1227_v38, %v1458_v37  ;;  %v102_v45 = vrot.slane %v1231_v40, %v1458_v37  ;;  %v1238_v59 = vld [vmem:[#allocation6 + $0x1c8] sm:$0xff]   ;;  %v1381_v40 = vmov 0.0  }
  0x47   :  { %v109_v43 = vrot.slane %v1229_v39, %v1458_v37  ;;  %v116_v46 = vrot.slane %v1232_v41, %v1458_v37  ;;  %v1236_v53 = vld [vmem:[#allocation6 + $0x180] sm:$0xff]   ;;  %v1239_v60 = vld [vmem:[#allocation6 + $0x108] sm:$0xff]   ;;  %v1241_v62 = vld [vmem:[#allocation6 + $0x150] sm:$0xff]  }
  0x48   :  { %1072 = vmatpush3.bf16.msra.mxu0 %v1209_v14  ;;  %v1240_v61 = vld [vmem:[#allocation6 + $0x188] sm:$0xff]   ;;  %v1242_v63 = vld [vmem:[#allocation6 + $0x1d0] sm:$0xff]   ;;  %v1245_v2 = vld [vmem:[#allocation6 + $0x158] sm:$0xff]  }
  0x49   :  { %1094 = vmatpush3.bf16.msra.mxu1 %v1210_v15  ;;  %1073 = vmatprep.subr.bf16.mxu0 %v1211_v16  ;;  %v118_v48 = vcombine.high %v95_v42, %v109_v43  ;;  %v117_v49 = vcombine.low %v95_v42, %v109_v43  ;;  %v120_v51 = vcombine.high %v102_v45, %v116_v46  ;;  %v1243_v0 = vld [vmem:[#allocation6 + $0x110] sm:$0xff]   ;;  %v1246_v3 = vld [vmem:[#allocation6 + $0x1d8] sm:$0xff]   ;;  %v1249_v6 = vld [vmem:[#allocation6 + $0x160] sm:$0xff]  }
  0x4a   :  { %1095 = vmatprep.subr.bf16.mxu1 %v1212_v17  ;;  %v119_v52 = vcombine.low %v102_v45, %v116_v46  ;;  %v1244_v1 = vld [vmem:[#allocation6 + $0x190] sm:$0xff]   ;;  %v1247_v4 = vld [vmem:[#allocation6 + $0x118] sm:$0xff]   ;;  %v1250_v7 = vld [vmem:[#allocation6 + $0x1e0] sm:$0xff]  }
  0x4b   :  { %v166_v54 = vpack.c.bf16 %v118_v48, %v118_v48  ;;  %v165_v55 = vpack.c.bf16 %v117_v49, %v117_v49  ;;  %v168_v57 = vpack.c.bf16 %v120_v51, %v120_v51  ;;  %v1248_v5 = vld [vmem:[#allocation6 + $0x198] sm:$0xff]   ;;  %v1251_v8 = vld [vmem:[#allocation6 + $0x120] sm:$0xff]   ;;  %v1253_v10 = vld [vmem:[#allocation6 + $0x168] sm:$0xff]  }
  0x4c   :  { %1074 = vmatpush3.bf16.msra.mxu0 %v1213_v18  ;;  %v167_v58 = vpack.c.bf16 %v119_v52, %v119_v52  ;;  %v1252_v9 = vld [vmem:[#allocation6 + $0x1a0] sm:$0xff]   ;;  %v1254_v11 = vld [vmem:[#allocation6 + $0x1e8] sm:$0xff]   ;;  %v1257_v14 = vld [vmem:[#allocation6 + $0x170] sm:$0xff]  }
  0x4d   :  { %1096 = vmatpush3.bf16.msra.mxu1 %v1214_v19  ;;  %1075 = vmatprep.subr.bf16.mxu0 %v1215_v20  ;;  %v1255_v12 = vld [vmem:[#allocation6 + $0x128] sm:$0xff]   ;;  %v1258_v15 = vld [vmem:[#allocation6 + $0x1f0] sm:$0xff]   ;;  %v1261_v18 = vld [vmem:[#allocation6 + $0x178] sm:$0xff]  }
  0x4e   :  { %1097 = vmatprep.subr.bf16.mxu1 %v1216_v21  ;;  %717 = vmatprep.mubr.bf16.mxu0 %v166_v54  ;;  %v1256_v13 = vld [vmem:[#allocation6 + $0x1a8] sm:$0xff]   ;;  %v1259_v16 = vld [vmem:[#allocation6 + $0x130] sm:$0xff]   ;;  %v1262_v19 = vld [vmem:[#allocation6 + $0x1f8] sm:$0xff]  }
  0x4f   :  { %757 = vmatprep.mubr.bf16.mxu1 %v168_v57  ;;  %v1260_v17 = vld [vmem:[#allocation6 + $0x1b0] sm:$0xff]   ;;  %v1263_v20 = vld [vmem:[#allocation6 + $0x138] sm:$0xff]   ;;  %v1271_v39 = vld [vmem:[#allocation8] sm:$0xff]  }
  0x50   :  { %1076 = vmatpush3.bf16.msra.mxu0 %v1217_v22  ;;  %v1264_v21 = vld [vmem:[#allocation6 + $0x1b8] sm:$0xff]   ;;  %v1272_v41 = vld [vmem:[#allocation8 + $0x8] sm:$0xff]   ;;  %v1275_v43 = vld [vmem:[#allocation8 + $0x20] sm:$0xff]  }
  0x51   :  { %1098 = vmatpush3.bf16.msra.mxu1 %v1218_v23  ;;  %1077 = vmatprep.subr.bf16.mxu0 %v1219_v27  ;;  %v1265_v22 = vld [vmem:[#allocation3 + $0x8] ss:$16 sps:$4 sm:$0xff]   ;;  %v1269_v24 = vld [vmem:[#allocation3 + $0xc] ss:$16 sps:$4 sm:$0xff]   ;;  %v1277_v45 = vld [vmem:[#allocation8 + $0x30] sm:$0xff]  }
  0x52   :  { %1099 = vmatprep.subr.bf16.mxu1 %v1220_v28  ;;  %v1267_v23 = vld [vmem:[#allocation3 + $0x28] ss:$16 sps:$4 sm:$0xff]   ;;  %v1270_v25 = vld [vmem:[#allocation3 + $0x2c] ss:$16 sps:$4 sm:$0xff]   ;;  %v131_v26 = vrot.slane %v1265_v22, %v1458_v37  ;;  %v138_v28 = vrot.slane %v1269_v24, %v1458_v37 }
  0x53   :  { %v145_v27 = vrot.slane %v1267_v23, %v1458_v37  ;;  %v1274_v42 = vld [vmem:[#allocation8 + $0x18] sm:$0xff]  }
  0x54   :  { %1078 = vmatpush3.bf16.msra.mxu0 %v1221_v29  ;;  %v152_v29 = vrot.slane %v1270_v25, %v1458_v37  ;;  %v1273_v37 = vld [vmem:[#allocation8 + $0x10] sm:$0xff]   ;;  %v1278_v46 = vld [vmem:[#allocation8 + $0x38] sm:$0xff]  }
  0x55   :  { %1100 = vmatpush3.bf16.msra.mxu1 %v1222_v30  ;;  %1079 = vmatprep.subr.bf16.mxu0 %v1223_v33  ;;  %v154_v30 = vcombine.high %v131_v26, %v145_v27  ;;  %v153_v31 = vcombine.low %v131_v26, %v145_v27 }
  0x56   :  { %1101 = vmatprep.subr.bf16.mxu1 %v1224_v34  ;;  %v156_v32 = vcombine.high %v138_v28, %v152_v29  ;;  %v155_v33 = vcombine.low %v138_v28, %v152_v29 }
  0x57   :  { %v170_v34 = vpack.c.bf16 %v154_v30, %v154_v30 }
  0x58   :  { %1080 = vmatpush3.bf16.msra.mxu0 %v1225_v35  ;;  %v169_v35 = vpack.c.bf16 %v153_v31, %v153_v31  ;;  %v171_v38 = vpack.c.bf16 %v155_v33, %v155_v33 }
  0x59   :  { %1102 = vmatpush3.bf16.msra.mxu1 %v1226_v36  ;;  %1109 = vmatprep.subr.bf16.mxu0 %v1233_v44  ;;  %v172_v36 = vpack.c.bf16 %v156_v32, %v156_v32  ;;  %v1276_v44 = vld [vmem:[#allocation8 + $0x28] sm:$0xff]  }
  0x5a   :  { %1131 = vmatprep.subr.bf16.mxu1 %v1234_v47 }
  0x5b   :  { %718 = vmatmul.mubr.bf16.vlgmr.msra.gmra.mrb[0].mxu0 %v165_v55 }
  0x5c   :  { %758 = vmatmul.mubr.bf16.vlgmr.msra.gmra.mrb[0].mxu1 %v167_v58  ;;  %1110 = vmatpush3.bf16.msra.mxu0 %v1235_v50 }
  0x5d   :  { %1132 = vmatpush3.bf16.msra.mxu1 %v1236_v53  ;;  %1111 = vmatprep.subr.bf16.mxu0 %v1237_v56 }
  0x5e   :  { %1133 = vmatprep.subr.bf16.mxu1 %v1238_v59  ;;  %797 = vmatprep.mubr.bf16.mxu0 %v170_v34 }
  0x5f   :  { %837 = vmatprep.mubr.bf16.mxu1 %v172_v36 }
  0x60   :  { %1112 = vmatpush3.bf16.msra.mxu0 %v1239_v60 }
  0x61   :  { %1134 = vmatpush3.bf16.msra.mxu1 %v1240_v61  ;;  %1113 = vmatprep.subr.bf16.mxu0 %v1241_v62 }
  0x62   :  { %1135 = vmatprep.subr.bf16.mxu1 %v1242_v63 }
  0x64   :  { %1114 = vmatpush3.bf16.msra.mxu0 %v1243_v0 }
  0x65   :  { %1136 = vmatpush3.bf16.msra.mxu1 %v1244_v1  ;;  %1115 = vmatprep.subr.bf16.mxu0 %v1245_v2 }
  0x66   :  { %1137 = vmatprep.subr.bf16.mxu1 %v1246_v3 }
  0x68   :  { %1116 = vmatpush3.bf16.msra.mxu0 %v1247_v4 }
  0x69   :  { %1138 = vmatpush3.bf16.msra.mxu1 %v1248_v5  ;;  %1117 = vmatprep.subr.bf16.mxu0 %v1249_v6  ;;  %v1055_v5 = vld [vmem:[%s1488_s2] ss:$0 sm:$0xff] }
  0x6a   :  { %1139 = vmatprep.subr.bf16.mxu1 %v1250_v7 }
  0x6c   :  { %1118 = vmatpush3.bf16.msra.mxu0 %v1251_v8 }
  0x6d   :  { %1140 = vmatpush3.bf16.msra.mxu1 %v1252_v9  ;;  %1119 = vmatprep.subr.bf16.mxu0 %v1253_v10  ;;  %v1056_v10 = vld [vmem:[%s1490_s4] ss:$0 sm:$0xff] }
  0x6e   :  { %1141 = vmatprep.subr.bf16.mxu1 %v1254_v11 }
  0x70   :  { %1120 = vmatpush3.bf16.msra.mxu0 %v1255_v12 }
  0x71   :  { %1142 = vmatpush3.bf16.msra.mxu1 %v1256_v13  ;;  %1121 = vmatprep.subr.bf16.mxu0 %v1257_v14 }
  0x72   :  { %1143 = vmatprep.subr.bf16.mxu1 %v1258_v15 }
  0x74   :  { %1122 = vmatpush3.bf16.msra.mxu0 %v1259_v16 }
  0x75   :  { %1144 = vmatpush3.bf16.msra.mxu1 %v1260_v17  ;;  %1123 = vmatprep.subr.bf16.mxu0 %v1261_v18 }
  0x76   :  { %1145 = vmatprep.subr.bf16.mxu1 %v1262_v19 }
  0x78   :  { %1124 = vmatpush3.bf16.msra.mxu0 %v1263_v20 }
  0x79   :  { %1146 = vmatpush3.bf16.msra.mxu1 %v1264_v21  ;;  %1162 = vmatprep.subr.bf16.mxu0 %v1381_v40 }
  0x7b   :  { %798 = vmatmul.mubr.bf16.vlgmr.msra.gmra.mrb[4].mxu0 %v169_v35 }
  0x7c   :  { %838 = vmatmul.mubr.bf16.vlgmr.msra.gmra.mrb[4].mxu1 %v171_v38  ;;  %1163 = vmatpush3.bf16.msra.mxu0 %v1271_v39 }
  0x7d   :  { %1164 = vmatprep.subr.bf16.mxu0 %v1381_v40  ;;  %1178 = vmatprep.mubr.msk.bf16.mxu0 %vm1382_vm0, %v1381_v40 }
  0x80   :  { %1165 = vmatpush3.bf16.msra.mxu0 %v1272_v41 }
  0x81   :  { %1166 = vmatprep.subr.bf16.mxu0 %v1381_v40 }
  0x84   :  { %1167 = vmatpush3.bf16.msra.mxu0 %v1273_v37 }
  0x85   :  { %1168 = vmatprep.subr.bf16.mxu0 %v1381_v40 }
  0x88   :  { %1169 = vmatpush3.bf16.msra.mxu0 %v1274_v42 }
  0x89   :  { %1170 = vmatprep.subr.bf16.mxu0 %v1381_v40 }
  0x8c   :  { %1171 = vmatpush3.bf16.msra.mxu0 %v1275_v43 }
  0x8d   :  { %1172 = vmatprep.subr.bf16.mxu0 %v1381_v40 }
  0x90   :  { %1173 = vmatpush3.bf16.msra.mxu0 %v1276_v44 }
  0x91   :  { %1174 = vmatprep.subr.bf16.mxu0 %v1381_v40 }
  0x94   :  { %1175 = vmatpush3.bf16.msra.mxu0 %v1277_v45 }
  0x95   :  { %1176 = vmatprep.subr.bf16.mxu0 %v1381_v40 }
  0x98   :  { %1177 = vmatpush3.bf16.msra.mxu0 %v1278_v46 }
 0x12e   :  { %v1081_v47 = vpop.f32.mrb[0].mxu0 }
 0x12f   :  { %v1103_v48 = vpop.f32.mrb[0].mxu1  ;;  %v1082_v49 = vpop.f32.mrb[1].mxu0 }
 0x130   :  { %v1083_v50 = vadd.f32 %v1082_v49, %v1081_v47  ;;  %v1104_v51 = vpop.f32.mrb[1].mxu1  ;;  %v1084_v52 = vpop.f32.mrb[2].mxu0 }
 0x131   :  { %v1105_v53 = vadd.f32 %v1104_v51, %v1103_v48  ;;  %v1106_v54 = vpop.f32.mrb[2].mxu1  ;;  %v1085_v55 = vpop.f32.mrb[3].mxu0 }
 0x132   :  { %v1107_v56 = vpop.f32.mrb[3].mxu1 }
 0x133   :  { %v760_v57 = vadd.f32 %v1105_v53, %v1083_v50 }
 0x14e   :  { %v1125_v58 = vpop.f32.mrb[4].mxu0 }
 0x14f   :  { %v1147_v59 = vpop.f32.mrb[4].mxu1  ;;  %v1126_v60 = vpop.f32.mrb[5].mxu0 }
 0x150   :  { %v1127_v61 = vadd.f32 %v1126_v60, %v1125_v58  ;;  %v1148_v62 = vpop.f32.mrb[5].mxu1  ;;  %v1128_v63 = vpop.f32.mrb[6].mxu0 }
 0x151   :  { %v1149_v0 = vadd.f32 %v1148_v62, %v1147_v59  ;;  %v1150_v1 = vpop.f32.mrb[6].mxu1  ;;  %v1129_v2 = vpop.f32.mrb[7].mxu0 }
 0x152   :  { %v800_v3 = vadd.f32 %v1127_v61, %v760_v57  ;;  %v1151_v4 = vpop.f32.mrb[7].mxu1 }
 0x154   :  { %v840_v6 = vadd.f32 %v1149_v0, %v800_v3 }
 0x156   :  { %v858_v7 = vadd.f32 %v1055_v5, %v840_v6 }
 0x158   :  { %v859_v8 = vmax.f32 %v858_v7, 0.0 }
 0x15a   :  { %v860_v9 = vpack.c.bf16 %v859_v8, %v859_v8 }
 0x15c   :  { %1179 = vmatmul.mubr.bf16.vlgmr.msra.gmra.mrb[8].mxu0 %v860_v9 }
 0x22f   :  { %v966_v11 = vpop.f32.mrb[8].mxu0 }
 0x230   :  { %v967_v12 = vadd.f32 %v1056_v10, %v966_v11  ;;  %v1180_v13 = vpop.f32.mrb[9].mxu0 }
 0x231   :  { %v969_v14 = vpop.f32.mrb[10].mxu0 }
 0x232   :  { %972 = vst [vmem:[#allocation9] sm:$0xff] %v967_v12  ;;  %v1181_v15 = vpop.f32.mrb[11].mxu0 }
 0x233   :  { %977 = vsyncadd [#allocation5], 96  ;;  %s1383_s10 = smov [#allocation9]  }
 0x234   :  { %s978_s11 = sshll.u32 %s1383_s10, 4  ;;  %s979_s11 = int_to_ptr.vmem [resolvable:$true] %s978_s11 }
 0x235   :  { %s1345_s2 = scalar_lea.vmem %s979_s11, 32  ;;  %s1349_s12 = scalar_lea.vmem %s979_s11, 128 }
 0x236   :  { %p1346_p10 = scmp.ne.s32.totalorder %s979_s11, %s1345_s2  ;;  %p1350_p11 = scmp.lt.s32.totalorder %s979_s11, %s979_s11 }
 0x237   :  { %p1351_p12 = scmp.lt.s32.totalorder %s1349_s12, %s1345_s2 }
 0x239   :  { %p1352_p13 = por %p1351_p12, %p1350_p11 }
 0x23b   :  { %p1353_p0 = pnand %p1352_p13, %p1346_p10 }
 0x23d   :  { %1356 = shalt.err (!%p1353_p0)
}
 0x23e   :  { %s1357_s14 = scalar_lea.hbm %s1491_s5, 32 }
 0x23f   :  { %p1358_p1 = scmp.ne.s32.totalorder %s1491_s5, %s1357_s14  ;;  %p1361_p2 = scmp.lt.u32.totalorder %s1357_s14, %s1491_s5 }
 0x241   :  { %p1363_p3 = pnand %p1361_p2, %p1358_p1 }
 0x243   :  { %1366 = shalt.err (!%p1363_p3)
}
 0x244   :  { %s1384_s18 = smov 32   ;;  %s1385_s19 = smov 2  }
 0x245   :  { %984 = dma.vmem_to_hbm [thread:$0]  %s979_s11, 32, %s1491_s5, [#allocation5], %s1384_s18, %s1384_s18, %s1385_s19  }
 0x246   :  { %1371 = dma.done.wait [#allocation5], 128  }
 0x247   :  { %1372 = vsyncadd [#allocation5], 4294967168 }
 0x248   :  { %988 = vsyncpa [#allocation4], 1 }
 0x249   :  { %989 = vsyncpa [#allocation7], 1 }
 0x24a   :  { %990 = vsyncpa [#allocation5], 1 }

</bundles_post_ra>
